<compile_context>
chip_gen: v6e
topology: v6e:2x2x1
jax: 0.10.0
libtpu: 0.0.40
codegen_flags: <defaults>
</compile_context>

<pallas_src>
import functools

import jax
import jax.numpy as jnp
from jax.experimental import pallas as pl
from jax.experimental.pallas import tpu as pltpu


def _pool_kernel(x_ref, out_ref, *, grid_k, k_total, rem):
    """Accumulate per-(batch, channel) spatial sums of one hw slice into out_ref (1, bn, C)."""
    p = pl.program_id(0)            # hw super-slice (parallel -> split across TensorCores)
    k = pl.program_id(2)            # hw chunk within the slice (arbitrary, innermost)
    gchunk = p * grid_k + k         # global chunk index (static grid_k)

    @pl.when(k == 0)
    def _():
        out_ref[...] = jnp.zeros_like(out_ref)

    if rem == 0:
        # Every real chunk is full; only skip the (at most one) duplicated/padded step that
        # exists when n_slices * grid_k > k_total (its index map was clamped to a valid chunk).
        @pl.when(gchunk < k_total)
        def _():
            x = x_ref[...].astype(jnp.float32)                       # (bn, C, hw_tile)
            out_ref[...] += jnp.sum(x, axis=-1)[None]
    else:
        # Interior chunks: plain sum, no masking work on the steady-state stream path.
        @pl.when(gchunk < k_total - 1)
        def _():
            x = x_ref[...].astype(jnp.float32)
            out_ref[...] += jnp.sum(x, axis=-1)[None]

        # Final (partial) chunk only: mask the out-of-bounds lanes.
        @pl.when(gchunk == k_total - 1)
        def _():
            x = x_ref[...].astype(jnp.float32)
            lane = jax.lax.broadcasted_iota(jnp.int32, x.shape, 2)
            x = jnp.where(lane < rem, x, 0.0)
            out_ref[...] += jnp.sum(x, axis=-1)[None]


def _epilogue_kernel(part_ref, w1_ref, b1_ref, w2_ref, out_ref, *, inv_hw):
    """Combine partial sums -> mean -> fc1(BN folded)+ReLU -> fc2 -> softmax.  Single step."""
    g = jnp.sum(part_ref[...], axis=0) * inv_hw                       # (N, C) global average

    h = jnp.dot(g, w1_ref[...], preferred_element_type=jnp.float32) + b1_ref[...]
    h = jnp.maximum(h, 0.0)                                           # (N, mid)

    logits = jnp.dot(h, w2_ref[...], preferred_element_type=jnp.float32)  # (N, F)

    m = jnp.max(logits, axis=-1, keepdims=True)
    e = jnp.exp(logits - m)
    soft = e * pl.reciprocal(jnp.sum(e, axis=-1, keepdims=True), approx=False)
    out_ref[...] = soft.astype(out_ref.dtype)


def scale_channel_attention(x, w1, gamma, beta, run_mean, run_var, w2, *, eps=1e-5):
    """x: (N, C, H, W). w1: (C, mid), w2: (mid, num_features), BN params: (mid,).
    Returns (N, num_features, 1, 1), matching the PyTorch module forward (eval-mode BN)."""
    N, C, H, W = x.shape
    mid = w1.shape[1]
    nfeat = w2.shape[1]
    hw = H * W
    itemsize = jnp.dtype(x.dtype).itemsize

    # ---- Fold eval-mode BatchNorm into fc1:  w1' = w1*s,  b1 = beta - mean*s ----
    s = jnp.reshape(gamma, (-1,)) * jax.lax.rsqrt(jnp.reshape(run_var, (-1,)) + eps)
    w1_f = (w1 * s[None, :]).astype(jnp.float32)                                   # (C, mid)
    b1 = (jnp.reshape(beta, (-1,)) - jnp.reshape(run_mean, (-1,)) * s)
    b1 = b1.reshape(1, mid).astype(jnp.float32)                                    # (1, mid)
    w2_f = w2.astype(jnp.float32)                                                  # (mid, F)

    x_flat = x.reshape(N, C, hw)

    # ---- Batch tiling: 8-row sublane-dense tiles, or the full batch when N < 8 ----
    bn = min(N, 8)                       # bn == N (full extent) or bn == 8 -> legal block
    grid_n = pl.cdiv(N, bn)

    # ---- Generation-aware VMEM / tile sizing ----
    try:
        vmem_cap = int(getattr(pltpu.get_tpu_info(), "vmem_capacity_bytes",
                               64 * 1024 * 1024))
    except Exception:                    # conservative fallback (v7x per-core VMEM)
        vmem_cap = 64 * 1024 * 1024
    vmem_limit = min(vmem_cap // 2, 96 * 1024 * 1024)
    budget = vmem_limit // 4             # per x buffer; double-buffered -> half the limit

    lanes = (budget // max(1, bn * C * itemsize)) // 128 * 128
    max_lanes = max(128, lanes)          # 128-lane floor clamped by the budget (not 512)
    hw_tile = hw if hw <= max_lanes else max_lanes
    # Ensure the double-buffered x slab (plus headroom) fits the scoped VMEM limit.
    x_block_bytes = bn * C * hw_tile * itemsize
    vmem_limit = int(min(vmem_cap, max(vmem_limit, 2 * x_block_bytes + (4 << 20))))

    k_total = pl.cdiv(hw, hw_tile)       # total spatial chunks
    n_slices = 2 if k_total >= 2 else 1  # parallel hw slices (feeds both v7x TensorCores)
    grid_k = pl.cdiv(k_total, n_slices)  # chunks per slice
    rem = hw % hw_tile                   # valid lanes in the last chunk (0 => full)

    if n_slices * grid_k == k_total:
        x_map = lambda p, n, k, GK=grid_k: (n, 0, p * GK + k)
    else:
        # One padded step on the last slice: clamp its chunk index to stay in-bounds;
        # the kernel skips its accumulation (gchunk >= k_total).
        x_map = lambda p, n, k, GK=grid_k, KT=k_total: (n, 0, jnp.minimum(p * GK + k, KT - 1))

    # ---- Stage 1: streaming global-average-pool partial sums ----
    partial = pl.pallas_call(
        functools.partial(_pool_kernel, grid_k=grid_k, k_total=k_total, rem=rem),
        out_shape=jax.ShapeDtypeStruct((n_slices, N, C), jnp.float32),
        grid_spec=pltpu.PrefetchScalarGridSpec(
            num_scalar_prefetch=0,
            grid=(n_slices, grid_n, grid_k),
            in_specs=[pl.BlockSpec((bn, C, hw_tile), x_map)],
            out_specs=pl.BlockSpec((1, bn, C), lambda p, n, k: (p, n, 0)),
        ),
        compiler_params=pltpu.CompilerParams(
            dimension_semantics=("parallel", "parallel", "arbitrary"),
            vmem_limit_bytes=vmem_limit,
        ),
        cost_estimate=pl.CostEstimate(
            flops=N * C * hw,
            transcendentals=0,
            bytes_accessed=N * C * hw * itemsize + n_slices * N * C * 4,
        ),
    )(x_flat)

    # ---- Stage 2: tiny epilogue (mean -> fc1+BN+ReLU -> fc2 -> softmax) ----
    out = pl.pallas_call(
        functools.partial(_epilogue_kernel, inv_hw=1.0 / hw),
        out_shape=jax.ShapeDtypeStruct((N, nfeat), x.dtype),
        in_specs=[pl.BlockSpec(memory_space=pltpu.MemorySpace.VMEM)] * 4,
        out_specs=pl.BlockSpec(memory_space=pltpu.MemorySpace.VMEM),
        cost_estimate=pl.CostEstimate(
            flops=2 * N * (C * mid + mid * nfeat) + 6 * N * nfeat,
            transcendentals=N * nfeat,
            bytes_accessed=(n_slices * N * C + C * mid + mid + mid * nfeat) * 4
                           + N * nfeat * itemsize,
        ),
    )(partial, w1_f, b1, w2_f)

    return out.reshape(N, nfeat, 1, 1)


def _reference(x, w1, gamma, beta, run_mean, run_var, w2, eps=1e-5):
    """Pure-JAX reference matching the PyTorch forward (eval-mode BN)."""
    g = jnp.mean(x, axis=(2, 3))                      # (N, C)  adaptive avg pool 1x1
    h = g @ w1                                        # (N, mid) fc1 (1x1 conv, no bias)
    h = (h - run_mean) / jnp.sqrt(run_var + eps) * gamma + beta
    h = jnp.maximum(h, 0.0)
    logits = h @ w2                                   # (N, F)  fc2 (1x1 conv, no bias)
    soft = jax.nn.softmax(logits, axis=-1)
    return soft[:, :, None, None]


if __name__ == "__main__":
    # Small shapes consistent with the module: in_channels=4, mid_channels=8, num_features=4
    N, C, H, W = 2, 4, 16, 16
    MID, NFEAT = 8, 4

    key = jax.random.PRNGKey(0)
    kx, kw1, kw2, kg, kb, km, kv = jax.random.split(key, 7)

    x = jax.random.normal(kx, (N, C, H, W), dtype=jnp.float32)

    # PyTorch fc1.weight is (mid, C, 1, 1); stored here transposed as (C, mid).
    w1 = jax.random.normal(kw1, (C, MID), dtype=jnp.float32) * 0.1
    w2 = jax.random.normal(kw2, (MID, NFEAT), dtype=jnp.float32) * 0.1
    gamma = 1.0 + 0.1 * jax.random.normal(kg, (MID,), dtype=jnp.float32)
    beta = 0.1 * jax.random.normal(kb, (MID,), dtype=jnp.float32)
    run_mean = 0.1 * jax.random.normal(km, (MID,), dtype=jnp.float32)
    run_var = jnp.abs(1.0 + 0.1 * jax.random.normal(kv, (MID,), dtype=jnp.float32))

    out = scale_channel_attention(x, w1, gamma, beta, run_mean, run_var, w2)
    out = jax.block_until_ready(out)

    ref = _reference(x, w1, gamma, beta, run_mean, run_var, w2)
    assert out.shape == (N, NFEAT, 1, 1)
    assert jnp.allclose(out, ref, atol=1e-5, rtol=1e-5), "mismatch vs reference"
    # softmax rows sum to 1
    assert jnp.allclose(jnp.sum(out, axis=1), 1.0, atol=1e-5)

    print("KERNEL_OK")
</pallas_src>

<mosaic_0001>
module attributes {stable_mosaic.version = 11 : i64} {
  func.func @_pool_kernel(%arg0: i32, %arg1: i32, %arg2: i32, %arg3: memref<2x4x256xf32, #tpu.memory_space<vmem>>, %arg4: memref<1x2x4xf32, #tpu.memory_space<vmem>>) attributes {dimension_semantics = [#tpu.dimension_semantics<parallel>, #tpu.dimension_semantics<parallel>, #tpu.dimension_semantics<arbitrary>], iteration_bounds = array<i64: 1, 1, 1>, scalar_prefetch = 0 : i64, scratch_operands = 0 : i64, tpu.core_type = #tpu.core_type<tc>, window_params = [{transform_indices = @transform_0, window_bounds = array<i64: 2, 4, 256>}, {transform_indices = @transform_1, window_bounds = array<i64: 1, 2, 4>}]} {
    %c1_i32 = arith.constant 1 : i32
    %0 = arith.muli %arg0, %c1_i32 : i32
    %1 = arith.addi %0, %arg2 : i32
    %c0_i32 = arith.constant 0 : i32
    %2 = arith.cmpi eq, %arg2, %c0_i32 : i32
    %3 = arith.extui %2 : i1 to i32
    %c0_i32_0 = arith.constant 0 : i32
    %4 = arith.cmpi ne, %3, %c0_i32_0 : i32
    scf.if %4 {
      %cst = arith.constant 0.000000e+00 : f32
      %8 = vector.broadcast %cst : f32 to vector<1x2x4xf32>
      %c0 = arith.constant 0 : index
      %c0_3 = arith.constant 0 : index
      %c0_4 = arith.constant 0 : index
      %9 = vector.load %arg4[%c0, %c0_3, %c0_4] : memref<1x2x4xf32, #tpu.memory_space<vmem>>, vector<1x2x4xf32>
      tpu.vector_store %arg4[%c0, %c0_3, %c0_4], %8 {strides = array<i32>} : memref<1x2x4xf32, #tpu.memory_space<vmem>>, vector<1x2x4xf32>,
    } else {
    }
    %c1_i32_1 = arith.constant 1 : i32
    %5 = arith.cmpi slt, %1, %c1_i32_1 : i32
    %6 = arith.extui %5 : i1 to i32
    %c0_i32_2 = arith.constant 0 : i32
    %7 = arith.cmpi ne, %6, %c0_i32_2 : i32
    scf.if %7 {
      %c0 = arith.constant 0 : index
      %c0_3 = arith.constant 0 : index
      %c0_4 = arith.constant 0 : index
      %8 = vector.load %arg3[%c0, %c0_3, %c0_4] : memref<2x4x256xf32, #tpu.memory_space<vmem>>, vector<2x4x256xf32>
      %c0_5 = arith.constant 0 : index
      %c0_6 = arith.constant 0 : index
      %c0_7 = arith.constant 0 : index
      %9 = vector.load %arg4[%c0_5, %c0_6, %c0_7] : memref<1x2x4xf32, #tpu.memory_space<vmem>>, vector<1x2x4xf32>
      %cst = arith.constant dense<0.000000e+00> : vector<2x4xf32>
      %10 = vector.multi_reduction <add>, %8, %cst [2] : vector<2x4x256xf32> to vector<2x4xf32>
      %11 = vector.shape_cast %10 : vector<2x4xf32> to vector<1x2x4xf32>
      %12 = arith.addf %9, %11 : vector<1x2x4xf32>
      %c0_8 = arith.constant 0 : index
      %c0_9 = arith.constant 0 : index
      %c0_10 = arith.constant 0 : index
      %13 = vector.load %arg4[%c0_8, %c0_9, %c0_10] : memref<1x2x4xf32, #tpu.memory_space<vmem>>, vector<1x2x4xf32>
      tpu.vector_store %arg4[%c0_8, %c0_9, %c0_10], %12 {strides = array<i32>} : memref<1x2x4xf32, #tpu.memory_space<vmem>>, vector<1x2x4xf32>,
    } else {
    }
    return
  }
  func.func @transform_0(%arg0: i32, %arg1: i32, %arg2: i32) -> (i32, i32, i32) {
    %c1_i32 = arith.constant 1 : i32
    %0 = arith.muli %arg0, %c1_i32 : i32
    %1 = arith.addi %0, %arg2 : i32
    %c0_i32 = arith.constant 0 : i32
    %c0_i32_0 = arith.constant 0 : i32
    return %arg1, %c0_i32, %1 : i32, i32, i32
  }
  func.func @transform_1(%arg0: i32, %arg1: i32, %arg2: i32) -> (i32, i32, i32) {
    %c0_i32 = arith.constant 0 : i32
    %c0_i32_0 = arith.constant 0 : i32
    return %arg0, %arg1, %c0_i32 : i32, i32, i32
  }
}

</mosaic_0001>

<bundles_post_ra>
// kernel: tpu_custom_call.1
= control target key start
LH: loop header
LB: loop body
LE: loop exit
PB: predicated region body
PF: predicated region fallthrough
CT: control target
= control target key end

     0   :  { %6 = vsyncpa [#allocation3], 0  ;;  %s167_s0 = inlined_call_operand.hbm [shape: f32[2,4,256], index: 0, kind: input, shape index: {}]   ;;  %s168_s1 = inlined_call_operand.hbm [shape: f32[1,2,4], index: 1, kind: output, shape index: {}]  }
   0x1   :  { %7 = vsyncpa [#allocation4], 0  ;;  %s144_s6 = smov [#allocation2]  }
   0x2   :  { %s17_s7 = sshll.u32 %s144_s6, 4  ;;  %s18_s7 = int_to_ptr.vmem [resolvable:$true] %s17_s7 }
   0x3   :  { %s108_s8 = scalar_lea.vmem %s18_s7, 256  ;;  %p113_p1 = scmp.lt.s32.totalorder %s18_s7, %s18_s7 }
   0x4   :  { %p109_p0 = scmp.ne.s32.totalorder %s18_s7, %s108_s8  ;;  %p114_p2 = scmp.lt.s32.totalorder %s108_s8, %s108_s8 }
   0x6   :  { %p115_p3 = por %p114_p2, %p113_p1 }
   0x8   :  { %p116_p4 = pnand %p115_p3, %p109_p0 }
   0xa   :  { %119 = shalt.err (!%p116_p4)
}
   0xb   :  { %s145_s9 = smov 128   ;;  %s146_s10 = smov 8  }
   0xc   :  { %23 = dma.hbm_to_vmem [thread:$0]  %s167_s0, 256, %s18_s7, [#allocation3], %s145_s9, %s145_s9, %s146_s10  }
   0xd   :  { %140 = dma.done.wait [#allocation3], 256  }
   0xe   :  { %141 = vsyncadd [#allocation3], 4294967040  ;;  %vm34_vm0 = vcmask 25600   ;;  %v147_v0 = vmov 0.0   ;;  %vm49_vm1 = vcmask 1043456   ;;  %v40_v1 = vld [vmem:[#allocation2] sm:$0xff]  ;;  %v62_v11 = vlaneseq }
   0xf   :  { %35 = vst.msk [vmem:[#allocation5] sm:$0x3] %vm34_vm0, %v147_v0  ;;  %v41_v2 = vld [vmem:[#allocation2 + $0x8] sm:$0xff]  ;;  %v45_v3 = vcombine.high %v40_v1, %v40_v1  ;;  %v50_v4 = vsel %vm49_vm1, %v40_v1, 0.0  ;;  %vm72_vm2 = vcmask 1041409   ;;  %s148_s0 = smov [#allocation5]  }
  0x10   :  { %v46_v5 = vcombine.high %v41_v2, %v41_v2  ;;  %v55_v7 = vsel %vm49_vm1, %v41_v2, 0.0  ;;  %v63_v12 = vand.u32 127, %v62_v11  ;;  %v65_v13 = vshrl.u32 %v62_v11, 7  ;;  %s84_s13 = sshll.u32 %s148_s0, 4  ;;  %s85_s13 = int_to_ptr.vmem [resolvable:$true] %s84_s13 }
  0x11   :  { %v51_v6 = vsel %vm49_vm1, %v45_v3, 0.0  ;;  %s120_s14 = scalar_lea.vmem %s85_s13, 32  ;;  %p125_p6 = scmp.lt.s32.totalorder %s85_s13, %s85_s13 }
  0x12   :  { %v56_v8 = vsel %vm49_vm1, %v46_v5, 0.0  ;;  %v52_v9 = vadd.f32 %v51_v6, %v50_v4  ;;  %v66_v15 = vsub.s32 %v63_v12, %v65_v13  ;;  %p121_p5 = scmp.ne.s32.totalorder %s85_s13, %s120_s14  ;;  %p126_p7 = scmp.lt.s32.totalorder %s120_s14, %s120_s14 }
  0x13   :  { %v57_v10 = vadd.f32 %v56_v8, %v55_v7 }
  0x14   :  { %53 = vadd.xlane.f32.xlu0 %v52_v9  ;;  %p127_p8 = por %p126_p7, %p125_p6 }
  0x16   :  { %v42_v18 = vld [vmem:[#allocation5] sm:$0x3]  ;;  %p128_p9 = pnand %p127_p8, %p121_p5 }
  0x18   :  { %58 = vadd.xlane.f32.xlu0 %v57_v10 }
  0x9d   :  { %v54_v14 = vpop.xlane.xlu0 %53 }
  0x9e   :  { %v67_v17 = vrot.slane %v54_v14, %v66_v15 }
  0xa1   :  { %v59_v16 = vpop.xlane.xlu0 %58 }
  0xa2   :  { %v71_v19 = vrot.slane %v59_v16, %v66_v15 }
  0xa4   :  { %v73_v20 = vsel %vm72_vm2, %v71_v19, %v67_v17 }
  0xa5   :  { %v75_v21 = vadd.f32 %v73_v20, %v42_v18 }
  0xa7   :  { %77 = vst.msk [vmem:[#allocation5] sm:$0x3] %vm34_vm0, %v75_v21 }
  0xa8   :  { %131 = shalt.err (!%p128_p9)
}
  0xa9   :  { %87 = dma.vmem_to_hbm [thread:$0]  %s85_s13, 32, %s168_s1, [#allocation4]  }
  0xaa   :  { %142 = dma.done.wait [#allocation4], 32  }
  0xab   :  { %143 = vsyncadd [#allocation4], 4294967264 }
  0xac   :  { %91 = vsyncpa [#allocation3], 1 }
  0xad   :  { %92 = vsyncpa [#allocation4], 1 }

</bundles_post_ra>
